<compile_context>
chip_gen: v6e
topology: v6e:2x2x1
jax: 0.10.0
libtpu: 0.0.40
codegen_flags: <defaults>
</compile_context>

<pallas_src>
import functools

import jax
import jax.numpy as jnp
from jax.experimental import pallas as pl
from jax.experimental.pallas import tpu as pltpu


def _silu(x):
    return x * jax.nn.sigmoid(x)


def _round_up(x, m):
    return ((x + m - 1) // m) * m


# --------------------------------------------------------------------------
# 1) torch.fft.fft(x, dim=-1) + abs  ->  real-DFT magnitude (half spectrum).
#    One fused dot against an interleaved [cos|sin] bf16 operand; 128-row
#    blocks; column-tiled; bf16 output.
# --------------------------------------------------------------------------
def dft_abs_kernel(x_ref, cs_ref, o_ref, *, cb):
    xb = x_ref[...].astype(cs_ref.dtype)
    y = jnp.dot(xb, cs_ref[...], preferred_element_type=jnp.float32)  # (Mb, 2cb)
    re = y[:, :cb]
    im = y[:, cb:]
    o_ref[...] = jnp.sqrt(re * re + im * im).astype(o_ref.dtype)


def make_dft_tables(L):
    # Precomputed ONCE at init (perf review item: no per-call trig setup).
    # TODO(synk): bf16 twiddles give ~1e-3 rel. error vs torch.fft at L=2400;
    # keep cs in f32 if bit-level parity with the PyTorch reference matters.
    Lh = L // 2 + 1                       # real-input symmetry: unique bins
    Lhp = _round_up(Lh, 128)
    cb = 256 if Lhp % 256 == 0 else 128   # output-column tile
    n = jnp.arange(L, dtype=jnp.int32)[:, None]
    k = jnp.arange(Lhp, dtype=jnp.int32)[None, :]
    phase = ((n * k) % L).astype(jnp.float32) * (2.0 * jnp.pi / L)
    mask = k < Lh
    cos_m = jnp.where(mask, jnp.cos(phase), 0.0)
    sin_m = jnp.where(mask, jnp.sin(phase), 0.0)   # sign irrelevant for |.|
    ncb = Lhp // cb
    # Interleave per column-block: [cos_j | sin_j | cos_{j+1} | sin_{j+1} ...]
    cs = jnp.stack([cos_m.reshape(L, ncb, cb),
                    sin_m.reshape(L, ncb, cb)], axis=2)
    cs = cs.reshape(L, 2 * Lhp).astype(jnp.bfloat16)
    return {'cs': cs, 'Lh': Lh, 'Lhp': Lhp, 'cb': cb}


def dft_abs_half(x2d, dft):
    # x2d: (M, L) f32  ->  (M, Lh) bf16  (|FFT| of the unique half spectrum)
    M, L = x2d.shape
    Lh, Lhp, cb = dft['Lh'], dft['Lhp'], dft['cb']
    Mb = 128                               # review: >=128 LHS rows per MXU pass
    Mp = _round_up(M, Mb)
    if Mp > M:
        x2d = jnp.pad(x2d, ((0, Mp - M), (0, 0)))
    kern = functools.partial(dft_abs_kernel, cb=cb)
    cost = pl.CostEstimate(
        flops=int(4 * Mp * L * Lhp + 3 * Mp * Lhp),
        transcendentals=int(Mp * Lhp),
        bytes_accessed=int(Mp * L * 4 + 2 * L * Lhp * 2 + Mp * Lhp * 2))
    out = pl.pallas_call(
        kern,
        out_shape=jax.ShapeDtypeStruct((Mp, Lhp), jnp.bfloat16),
        grid=(Mp // Mb, Lhp // cb),
        in_specs=[
            pl.BlockSpec((Mb, L), lambda i, j: (i, 0)),
            pl.BlockSpec((L, 2 * cb), lambda i, j: (0, j)),
        ],
        out_specs=pl.BlockSpec((Mb, cb), lambda i, j: (i, j)),
        compiler_params=pltpu.CompilerParams(
            dimension_semantics=("parallel", "parallel")),
        cost_estimate=cost,
    )(x2d, dft['cs'])
    return out[:M, :Lh]


# --------------------------------------------------------------------------
# 2) Conv1d + BatchNorm + SiLU (cnn1..cnn3), im2col fused in-kernel.
#    One sample per grid step; K accumulating dots over halo-shifted slices.
# --------------------------------------------------------------------------
def conv_bn_silu_kernel(x_ref, w_ref, b_ref, o_ref, *, K, L):
    # x_ref: (1, L+K-1, Cin) bf16 (halo pre-padded); w_ref: (K, Cin, Cout) bf16
    # b_ref: (1, Cout) f32; o_ref: (1, L, Cout) bf16
    x = x_ref[0]
    acc = jnp.zeros((L, o_ref.shape[-1]), jnp.float32)
    for j in range(K):                       # static, unrolled tap loop
        acc = acc + jnp.dot(x[j:j + L, :].astype(w_ref.dtype), w_ref[j],
                            preferred_element_type=jnp.float32)
    o_ref[0] = _silu(acc + b_ref[...]).astype(o_ref.dtype)


def conv_bn_silu(h, p):
    # h: (N, L, Cin) bf16  ->  (N, L, Cout) bf16
    N, L, Cin = h.shape
    K = p['K']
    Cout = p['w'].shape[-1]
    left = (K - 1) // 2
    right = K - 1 - left
    hp = jnp.pad(h, ((0, 0), (left, right), (0, 0)))   # tiny halo pad only
    kern = functools.partial(conv_bn_silu_kernel, K=K, L=L)
    cost = pl.CostEstimate(
        flops=int(2 * N * L * K * Cin * Cout),
        transcendentals=int(N * L * Cout),
        bytes_accessed=int(N * (L + K - 1) * Cin * 2 + K * Cin * Cout * 2
                           + N * L * Cout * 2))
    return pl.pallas_call(
        kern,
        out_shape=jax.ShapeDtypeStruct((N, L, Cout), jnp.bfloat16),
        grid=(N,),
        in_specs=[
            pl.BlockSpec((1, L + K - 1, Cin), lambda n: (n, 0, 0)),
            pl.BlockSpec((K, Cin, Cout), lambda n: (0, 0, 0)),
            pl.BlockSpec((1, Cout), lambda n: (0, 0)),
        ],
        out_specs=pl.BlockSpec((1, L, Cout), lambda n: (n, 0, 0)),
        compiler_params=pltpu.CompilerParams(
            dimension_semantics=("parallel",)),
        cost_estimate=cost,
    )(hp, p['w'], p['b'])


# --------------------------------------------------------------------------
# 3) cnn4: Conv1d(64->1) + Flatten + BatchNorm1d(L) + SiLU, lane-dense output.
#    Input is the (N, Cin, L) activation (no K-expanded tensor); per-tap
#    (1, Cin) @ (Cin, L) accumulation writes an L-wide row.
# --------------------------------------------------------------------------
def conv4_bn_silu_kernel(x_ref, w_ref, scale_ref, shift_ref, o_ref, *, K, L):
    # x_ref: (1, Cin, L+K-1) bf16; w_ref: (K, 1, Cin) bf16; scale/shift: (1, L)
    x = x_ref[0]
    acc = jnp.zeros((1, L), jnp.float32)
    for j in range(K):                       # static, unrolled (K=4)
        acc = acc + jnp.dot(w_ref[j], x[:, j:j + L].astype(w_ref.dtype),
                            preferred_element_type=jnp.float32)
    o_ref[0] = _silu(acc * scale_ref[...] + shift_ref[...])


def conv4_bn_silu(h_t, p):
    # h_t: (N, Cin, L) bf16  ->  (N, 1, L) f32
    N, Cin, L = h_t.shape
    K = p['K']
    left = (K - 1) // 2
    right = K - 1 - left
    hp = jnp.pad(h_t, ((0, 0), (0, 0), (left, right)))
    kern = functools.partial(conv4_bn_silu_kernel, K=K, L=L)
    return pl.pallas_call(
        kern,
        out_shape=jax.ShapeDtypeStruct((N, 1, L), jnp.float32),
        grid=(N,),
        in_specs=[
            pl.BlockSpec((1, Cin, L + K - 1), lambda n: (n, 0, 0)),
            pl.BlockSpec((K, 1, Cin), lambda n: (0, 0, 0)),
            pl.BlockSpec((1, L), lambda n: (0, 0)),
            pl.BlockSpec((1, L), lambda n: (0, 0)),
        ],
        out_specs=pl.BlockSpec((1, 1, L), lambda n: (n, 0, 0)),
        compiler_params=pltpu.CompilerParams(
            dimension_semantics=("parallel",)),
    )(hp, p['w'], p['scale'], p['shift'])


# --------------------------------------------------------------------------
# 4) Generic tiled  y = act(x @ w + b)  (LSTM input projection, final Linear).
#    Row blocking is padded (never a full-R block); columns tiled so the
#    weight tile stays bounded in VMEM on v5e/v7x.
# --------------------------------------------------------------------------
def matmul_bias_kernel(x_ref, w_ref, b_ref, o_ref, *, act):
    xb = x_ref[...].astype(w_ref.dtype)
    y = jnp.dot(xb, w_ref[...], preferred_element_type=jnp.float32) + b_ref[...]
    if act is not None:
        y = act(y)
    o_ref[...] = y.astype(o_ref.dtype)


def matmul_bias(x, w, b, act=None, rb=256, out_dtype=jnp.float32):
    # x: (R, Kc); w: (Kc, C) bf16/f32; b: (1, C) f32  ->  (R, C) out_dtype
    R, Kc = x.shape
    C = w.shape[-1]
    rb = min(rb, _round_up(R, 8))
    Rp = _round_up(R, rb)
    if Rp > R:
        x = jnp.pad(x, ((0, Rp - R), (0, 0)))
    if C % 512 == 0:
        cb = 512
    elif C % 256 == 0:
        cb = 256
    elif C % 128 == 0:
        cb = 128
    else:
        cb = C
    kern = functools.partial(matmul_bias_kernel, act=act)
    cost = pl.CostEstimate(
        flops=int(2 * Rp * Kc * C), transcendentals=0,
        bytes_accessed=int(Rp * Kc * x.dtype.itemsize
                           + Kc * C * w.dtype.itemsize
                           + Rp * C * jnp.dtype(out_dtype).itemsize))
    out = pl.pallas_call(
        kern,
        out_shape=jax.ShapeDtypeStruct((Rp, C), out_dtype),
        grid=(Rp // rb, C // cb),
        in_specs=[
            pl.BlockSpec((rb, Kc), lambda i, j: (i, 0)),
            pl.BlockSpec((Kc, cb), lambda i, j: (0, j)),
            pl.BlockSpec((1, cb), lambda i, j: (0, j)),
        ],
        out_specs=pl.BlockSpec((rb, cb), lambda i, j: (i, j)),
        compiler_params=pltpu.CompilerParams(
            dimension_semantics=("parallel", "parallel"),
            vmem_limit_bytes=48 * 1024 * 1024),
        cost_estimate=cost,
    )(x, w, b)
    return out[:R] if Rp > R else out


# --------------------------------------------------------------------------
# 5) LSTM recurrence (x @ Wih precomputed).  Whh is bf16 (f32 accumulation),
#    hidden padded per-gate to a multiple of 128 -> lane-aligned gate slices.
# --------------------------------------------------------------------------
def lstm_kernel(gx_ref, whh_ref, h_out_ref, h_sc, c_sc, *, Hp):
    t = pl.program_id(0)

    @pl.when(t == 0)
    def _():
        h_sc[...] = jnp.zeros_like(h_sc)
        c_sc[...] = jnp.zeros_like(c_sc)

    gates = gx_ref[0] + jnp.dot(h_sc[...].astype(whh_ref.dtype), whh_ref[...],
                                preferred_element_type=jnp.float32)
    i = jax.nn.sigmoid(gates[:, 0:Hp])           # PyTorch gate order: i, f, g, o
    f = jax.nn.sigmoid(gates[:, Hp:2 * Hp])
    g = jnp.tanh(gates[:, 2 * Hp:3 * Hp])
    o = jax.nn.sigmoid(gates[:, 3 * Hp:4 * Hp])
    c = f * c_sc[...] + i * g
    h = o * jnp.tanh(c)
    c_sc[...] = c
    h_sc[...] = h
    h_out_ref[0] = h


def lstm_recurrence(gates_x, whh_t, Hp):
    # gates_x: (T, Bp, 4Hp) precomputed x@Wih + b  ->  (T, Bp, Hp)
    T, Bp, G = gates_x.shape
    kern = functools.partial(lstm_kernel, Hp=Hp)
    return pl.pallas_call(
        kern,
        out_shape=jax.ShapeDtypeStruct((T, Bp, Hp), jnp.float32),
        grid=(T,),
        in_specs=[
            pl.BlockSpec((1, Bp, G), lambda t: (t, 0, 0)),
            pl.BlockSpec((Hp, G), lambda t: (0, 0)),
        ],
        out_specs=pl.BlockSpec((1, Bp, Hp), lambda t: (t, 0, 0)),
        scratch_shapes=[pltpu.VMEM((Bp, Hp), jnp.float32),
                        pltpu.VMEM((Bp, Hp), jnp.float32)],
        compiler_params=pltpu.CompilerParams(
            dimension_semantics=("arbitrary",)),
    )(gates_x, whh_t)


# --------------------------------------------------------------------------
# Parameters (deterministic PyTorch-style init; BN folded for eval mode).
# --------------------------------------------------------------------------
def init_params(key, in_cha, out_cha, L, hidden):
    eps = 1e-5
    k1, k2, k3, k4, kl, kf = jax.random.split(key, 6)

    def conv_channel_bn(k, Cin, Cout, K):
        ka, kb, kc, kd, ke, kg = jax.random.split(k, 6)
        bound = 1.0 / jnp.sqrt(float(Cin * K))
        w = jax.random.uniform(ka, (K, Cin, Cout), minval=-bound, maxval=bound)
        b = jax.random.uniform(kb, (Cout,), minval=-bound, maxval=bound)
        gamma = 1.0 + 0.1 * jax.random.normal(kc, (Cout,))
        beta = 0.1 * jax.random.normal(kd, (Cout,))
        mean = 0.1 * jax.random.normal(ke, (Cout,))
        var = jnp.abs(1.0 + 0.1 * jax.random.normal(kg, (Cout,)))
        s = gamma / jnp.sqrt(var + eps)
        return {'w': (w * s[None, None, :]).astype(jnp.bfloat16),     # BN scale folded
                'b': ((b - mean) * s + beta).reshape(1, Cout).astype(jnp.float32),
                'K': K}

    def conv_pos_bn(k, Cin, K, Lpos):
        ka, kb, kc, kd, ke, kg = jax.random.split(k, 6)
        bound = 1.0 / jnp.sqrt(float(Cin * K))
        w = jax.random.uniform(ka, (K, 1, Cin), minval=-bound, maxval=bound)
        b = jax.random.uniform(kb, (1,), minval=-bound, maxval=bound)
        gamma = 1.0 + 0.1 * jax.random.normal(kc, (Lpos,))
        beta = 0.1 * jax.random.normal(kd, (Lpos,))
        mean = 0.1 * jax.random.normal(ke, (Lpos,))
        var = jnp.abs(1.0 + 0.1 * jax.random.normal(kg, (Lpos,)))
        s = gamma / jnp.sqrt(var + eps)
        return {'w': w.astype(jnp.bfloat16),
                'scale': s.reshape(1, Lpos).astype(jnp.float32),
                'shift': ((b[0] - mean) * s + beta).reshape(1, Lpos).astype(jnp.float32),
                'K': K}

    params = {
        'dft': make_dft_tables(L),
        'cnn1': conv_channel_bn(k1, in_cha, 64, 16),
        'cnn2': conv_channel_bn(k2, 64, 128, 16),
        'cnn3': conv_channel_bn(k3, 128, 64, 8),
        'cnn4': conv_pos_bn(k4, 64, 4, L),
    }

    # --- LSTM (gate columns padded to a 128 multiple so slices lane-align) ---
    H = hidden
    Hp = _round_up(H, 128)
    kl1, kl2, kl3, kl4 = jax.random.split(kl, 4)
    bound = 1.0 / jnp.sqrt(float(H))
    wih_t = jax.random.uniform(kl1, (L, 4 * H), minval=-bound, maxval=bound)
    whh_t = jax.random.uniform(kl2, (H, 4 * H), minval=-bound, maxval=bound)
    b_ih = jax.random.uniform(kl3, (4 * H,), minval=-bound, maxval=bound)
    b_hh = jax.random.uniform(kl4, (4 * H,), minval=-bound, maxval=bound)

    def pad_gate_cols(m):   # (rows, 4H) -> (rows, 4Hp), zero pad per gate
        r = m.shape[0]
        return jnp.pad(m.reshape(r, 4, H),
                       ((0, 0), (0, 0), (0, Hp - H))).reshape(r, 4 * Hp)

    wih_p = pad_gate_cols(wih_t).astype(jnp.bfloat16)                    # (L, 4Hp)
    whh_p = jnp.pad(pad_gate_cols(whh_t),
                    ((0, Hp - H), (0, 0))).astype(jnp.bfloat16)          # (Hp, 4Hp)
    b_p = pad_gate_cols((b_ih + b_hh).reshape(1, 4 * H)).astype(jnp.float32)
    params['lstm'] = {'wih_t': wih_p, 'whh_t': whh_p, 'b': b_p, 'H': H, 'Hp': Hp}

    kf1, kf2 = jax.random.split(kf, 2)
    fc_w = jax.random.uniform(kf1, (H, out_cha), minval=-bound, maxval=bound)
    params['fc'] = {
        'w': jnp.pad(fc_w, ((0, Hp - H), (0, 0))).astype(jnp.float32),   # (Hp, O)
        'b': jax.random.uniform(kf2, (1, out_cha),
                                minval=-bound, maxval=bound).astype(jnp.float32),
    }
    return params


# --------------------------------------------------------------------------
# Forward: mirrors Wipose_LSTM.forward (eval mode; Dropout = identity).
# --------------------------------------------------------------------------
def wipose_lstm_forward(params, x):
    # x: (B, T, in_cha, L) float32
    B, T, Cin, L = x.shape
    N = B * T
    Hp = params['lstm']['Hp']
    O = params['fc']['w'].shape[-1]
    Lh = params['dft']['Lh']

    # |FFT| via half-spectrum real DFT kernel.
    mag_h = dft_abs_half(x.reshape(N * Cin, L), params['dft'])   # (N*Cin, Lh) bf16
    # TODO(synk): spectrum mirror (lane reversal) stays as cheap bf16 XLA glue;
    # Mosaic has no reliable in-kernel lane-reverse primitive to fold it in.
    mag = jnp.concatenate(
        [mag_h, mag_h[:, 1:L - Lh + 1][:, ::-1]], axis=-1)       # (N*Cin, L) bf16
    h = mag.reshape(N, Cin, L).transpose(0, 2, 1)                # (N, L, Cin) bf16

    # cnn1..cnn3: fused conv + BN + SiLU kernels (im2col done in-kernel).
    for name in ('cnn1', 'cnn2', 'cnn3'):
        h = conv_bn_silu(h, params[name])                        # (N, L, Cout) bf16

    # cnn4: transpose only the raw activation (small), lane-dense tap reduce.
    feat = conv4_bn_silu(h.transpose(0, 2, 1), params['cnn4'])   # (N, 1, L) f32
    feat = feat.reshape(B, T, L)

    # permute(1, 0, 2) -> LSTM -> Linear -> permute back.
    Bp = _round_up(B, 8)                                         # 8-sublane batch pad
    x_seq = jnp.pad(feat.transpose(1, 0, 2), ((0, 0), (0, Bp - B), (0, 0)))

    # Hoisted input projection: one parallel, column-tiled GEMM for all steps.
    gates_x = matmul_bias(x_seq.reshape(T * Bp, L),
                          params['lstm']['wih_t'], params['lstm']['b'],
                          act=None).reshape(T, Bp, 4 * Hp)

    h_seq = lstm_recurrence(gates_x, params['lstm']['whh_t'], Hp)   # (T, Bp, Hp)

    out = matmul_bias(h_seq.reshape(T * Bp, Hp),
                      params['fc']['w'], params['fc']['b'],
                      act=None).reshape(T, Bp, O)
    return out[:, :B, :].transpose(1, 0, 2)                      # (B, T, out_cha)


if __name__ == "__main__":
    # Small shapes consistent with the module structure:
    #   original: (B, 12, 7, 2400), hidden 544  ->  here: (2, 4, 7, 256), hidden 128
    B, T, Cin, L = 2, 4, 7, 256
    HIDDEN, OUT_CHA = 128, 4

    key = jax.random.PRNGKey(0)
    kx, kp = jax.random.split(key)
    x = jax.random.normal(kx, (B, T, Cin, L), dtype=jnp.float32)
    params = init_params(kp, in_cha=Cin, out_cha=OUT_CHA, L=L, hidden=HIDDEN)

    y = wipose_lstm_forward(params, x)
    y = jax.block_until_ready(y)
    assert y.shape == (B, T, OUT_CHA), y.shape
    assert bool(jnp.all(jnp.isfinite(y)))
    print("KERNEL_OK")
</pallas_src>

<mosaic_0001>
module attributes {stable_mosaic.version = 11 : i64} {
  func.func @dft_abs_kernel(%arg0: i32, %arg1: i32, %arg2: memref<128x256xf32, #tpu.memory_space<vmem>>, %arg3: memref<256x512xbf16, #tpu.memory_space<vmem>>, %arg4: memref<128x256xbf16, #tpu.memory_space<vmem>>) attributes {dimension_semantics = [#tpu.dimension_semantics<parallel>, #tpu.dimension_semantics<parallel>], iteration_bounds = array<i64: 1, 1>, scalar_prefetch = 0 : i64, scratch_operands = 0 : i64, tpu.core_type = #tpu.core_type<tc>, window_params = [{transform_indices = @transform_0, window_bounds = array<i64: 128, 256>}, {transform_indices = @transform_1, window_bounds = array<i64: 256, 512>}, {transform_indices = @transform_2, window_bounds = array<i64: 128, 256>}]} {
    %c0 = arith.constant 0 : index
    %c0_0 = arith.constant 0 : index
    %0 = vector.load %arg2[%c0, %c0_0] : memref<128x256xf32, #tpu.memory_space<vmem>>, vector<128x256xf32>
    %1 = arith.truncf %0 : vector<128x256xf32> to vector<128x256xbf16>
    %c0_1 = arith.constant 0 : index
    %c0_2 = arith.constant 0 : index
    %2 = vector.load %arg3[%c0_1, %c0_2] : memref<256x512xbf16, #tpu.memory_space<vmem>>, vector<256x512xbf16>
    %cst = arith.constant dense<0.000000e+00> : vector<128x512xf32>
    %3 = tpu.matmul %1, %2, %cst {dimension_numbers = #tpu.dot_dimension_numbers<[1], [0], [0], [1], [0, 0, 1, 1], [], []>} : vector<128x256xbf16>, vector<256x512xbf16>, vector<128x512xf32> -> vector<128x512xf32>
    %4 = vector.extract_strided_slice %3 {offsets = [0, 0], sizes = [128, 256], strides = [1, 1]} : vector<128x512xf32> to vector<128x256xf32>
    %5 = vector.extract_strided_slice %3 {offsets = [0, 256], sizes = [128, 256], strides = [1, 1]} : vector<128x512xf32> to vector<128x256xf32>
    %6 = arith.mulf %4, %4 : vector<128x256xf32>
    %7 = arith.mulf %5, %5 : vector<128x256xf32>
    %8 = arith.addf %6, %7 : vector<128x256xf32>
    %9 = math.sqrt %8 : vector<128x256xf32>
    %10 = arith.truncf %9 : vector<128x256xf32> to vector<128x256xbf16>
    %c0_3 = arith.constant 0 : index
    %c0_4 = arith.constant 0 : index
    %11 = vector.load %arg4[%c0_3, %c0_4] : memref<128x256xbf16, #tpu.memory_space<vmem>>, vector<128x256xbf16>
    tpu.vector_store %arg4[%c0_3, %c0_4], %10 {strides = array<i32>} : memref<128x256xbf16, #tpu.memory_space<vmem>>, vector<128x256xbf16>,
    return
  }
  func.func @transform_0(%arg0: i32, %arg1: i32) -> (i32, i32) {
    %c0_i32 = arith.constant 0 : i32
    %c0_i32_0 = arith.constant 0 : i32
    return %arg0, %c0_i32 : i32, i32
  }
  func.func @transform_1(%arg0: i32, %arg1: i32) -> (i32, i32) {
    %c0_i32 = arith.constant 0 : i32
    %c0_i32_0 = arith.constant 0 : i32
    return %c0_i32, %arg1 : i32, i32
  }
  func.func @transform_2(%arg0: i32, %arg1: i32) -> (i32, i32) {
    %c0_i32 = arith.constant 0 : i32
    return %arg0, %arg1 : i32, i32
  }
}

</mosaic_0001>

<bundles_post_ra>
// kernel: tpu_custom_call.1
= control target key start
LH: loop header
LB: loop body
LE: loop exit
PB: predicated region body
PF: predicated region fallthrough
CT: control target
= control target key end

     0   :  { %7 = vsyncpa [#allocation3], 0  ;;  %s1848_s0 = inlined_call_operand.hbm [shape: f32[128,256], index: 0, kind: input, shape index: {}]   ;;  %s1849_s1 = inlined_call_operand.hbm [shape: bf16[256,512], index: 1, kind: input, shape index: {}]   ;;  %s1850_s2 = inlined_call_operand.hbm [shape: bf16[128,256], index: 2, kind: output, shape index: {}]  }
   0x1   :  { %8 = vsyncpa [#allocation6], 0 }
   0x2   :  { %9 = vsyncpa [#allocation4], 0  ;;  %s1477_s9 = smov [#allocation2]  }
   0x3   :  { %s15_s10 = sshll.u32 %s1477_s9, 4  ;;  %s16_s10 = int_to_ptr.vmem [resolvable:$true] %s15_s10 }
   0x4   :  { %s1419_s11 = scalar_lea.vmem %s16_s10, 4096  ;;  %p1424_p1 = scmp.lt.s32.totalorder %s16_s10, %s16_s10 }
   0x5   :  { %p1420_p0 = scmp.ne.s32.totalorder %s16_s10, %s1419_s11  ;;  %p1425_p2 = scmp.lt.s32.totalorder %s1419_s11, %s1419_s11 }
   0x7   :  { %p1426_p3 = por %p1425_p2, %p1424_p1 }
   0x9   :  { %p1427_p4 = pnand %p1426_p3, %p1420_p0 }
   0xb   :  { %1430 = shalt.err (!%p1427_p4)
}
   0xc   :  { %s1478_s12 = smov 256   ;;  %s1479_s13 = smov 16  }
   0xd   :  { %21 = dma.hbm_to_vmem [thread:$0]  %s1848_s0, 4096, %s16_s10, [#allocation3], %s1478_s12, %s1478_s12, %s1479_s13  }
   0xe   :  { %s1480_s16 = smov [#allocation5]  }
   0xf   :  { %s27_s17 = sshll.u32 %s1480_s16, 4  ;;  %s28_s17 = int_to_ptr.vmem [resolvable:$true] %s27_s17 }
  0x10   :  { %s1439_s18 = scalar_lea.vmem %s28_s17, 8192  ;;  %p1444_p6 = scmp.lt.s32.totalorder %s28_s17, %s28_s17 }
  0x11   :  { %p1440_p5 = scmp.ne.s32.totalorder %s28_s17, %s1439_s18  ;;  %p1445_p7 = scmp.lt.s32.totalorder %s1439_s18, %s1439_s18 }
  0x13   :  { %p1446_p8 = por %p1445_p7, %p1444_p6 }
  0x15   :  { %p1447_p9 = pnand %p1446_p8, %p1440_p5 }
  0x17   :  { %1450 = shalt.err (!%p1447_p9)
}
  0x18   :  { %33 = dma.hbm_to_vmem [thread:$0]  %s1849_s1, 8192, %s28_s17, [#allocation6], %s1478_s12, %s1478_s12, %s1479_s13  }
  0x19   :  { %1471 = dma.done.wait [#allocation3], 4096  }
  0x1a   :  { %1472 = vsyncadd [#allocation3], 4294963200 }
  0x1b   :  { %1473 = dma.done.wait [#allocation6], 8192  }
  0x1c   :  { %1474 = vsyncadd [#allocation6], 4294959104  ;;  %v1251_v0 = vld [vmem:[#allocation5 + $0xe4] ss:$16 sps:$4 sm:$0xff]   ;;  %v1253_v1 = vld [vmem:[#allocation5 + $0xec] ss:$16 sps:$4 sm:$0xff]  }
  0x1d   :  { %472 = vmatprep.subr.bf16.mxu0 %v1251_v0  ;;  %v1255_v2 = vld [vmem:[#allocation5 + $0xe0] ss:$16 sps:$4 sm:$0xff]   ;;  %v1256_v3 = vld [vmem:[#allocation5 + $0xe8] ss:$16 sps:$4 sm:$0xff]   ;;  %585 = vmatprep.subr.bf16.mxu1 %v1253_v1  ;;  %v1257_v4 = vld [vmem:[#allocation5 + $0xc4] ss:$16 sps:$4 sm:$0xff]  }
  0x1e   :  { %473 = vmatpush1.bf16.msra.mxu0 %v1255_v2  ;;  %586 = vmatpush1.bf16.msra.mxu1 %v1256_v3  ;;  %v1259_v5 = vld [vmem:[#allocation5 + $0xcc] ss:$16 sps:$4 sm:$0xff]   ;;  %v1261_v6 = vld [vmem:[#allocation5 + $0xc0] ss:$16 sps:$4 sm:$0xff]   ;;  %v1262_v7 = vld [vmem:[#allocation5 + $0xc8] ss:$16 sps:$4 sm:$0xff]  }
  0x1f   :  { %474 = vmatprep.subr.bf16.mxu0 %v1257_v4  ;;  %587 = vmatprep.subr.bf16.mxu1 %v1259_v5  ;;  %v1263_v8 = vld [vmem:[#allocation5 + $0xa4] ss:$16 sps:$4 sm:$0xff]   ;;  %v1265_v9 = vld [vmem:[#allocation5 + $0xac] ss:$16 sps:$4 sm:$0xff]   ;;  %v1267_v10 = vld [vmem:[#allocation5 + $0xa0] ss:$16 sps:$4 sm:$0xff]  }
  0x20   :  { %v1268_v11 = vld [vmem:[#allocation5 + $0xa8] ss:$16 sps:$4 sm:$0xff]   ;;  %v1269_v12 = vld [vmem:[#allocation5 + $0x84] ss:$16 sps:$4 sm:$0xff]   ;;  %v1271_v13 = vld [vmem:[#allocation5 + $0x8c] ss:$16 sps:$4 sm:$0xff]  }
  0x21   :  { %v1273_v14 = vld [vmem:[#allocation5 + $0x80] ss:$16 sps:$4 sm:$0xff]   ;;  %v1274_v15 = vld [vmem:[#allocation5 + $0x88] ss:$16 sps:$4 sm:$0xff]   ;;  %v1275_v16 = vld [vmem:[#allocation5 + $0x64] ss:$16 sps:$4 sm:$0xff]  }
  0x22   :  { %475 = vmatpush1.bf16.msra.mxu0 %v1261_v6  ;;  %588 = vmatpush1.bf16.msra.mxu1 %v1262_v7  ;;  %v1277_v17 = vld [vmem:[#allocation5 + $0x6c] ss:$16 sps:$4 sm:$0xff]   ;;  %v1279_v18 = vld [vmem:[#allocation5 + $0x60] ss:$16 sps:$4 sm:$0xff]   ;;  %v1280_v19 = vld [vmem:[#allocation5 + $0x68] ss:$16 sps:$4 sm:$0xff]  }
  0x23   :  { %476 = vmatprep.subr.bf16.mxu0 %v1263_v8  ;;  %589 = vmatprep.subr.bf16.mxu1 %v1265_v9  ;;  %v1281_v20 = vld [vmem:[#allocation5 + $0x44] ss:$16 sps:$4 sm:$0xff]   ;;  %v1283_v21 = vld [vmem:[#allocation5 + $0x4c] ss:$16 sps:$4 sm:$0xff]   ;;  %v1285_v22 = vld [vmem:[#allocation5 + $0x40] ss:$16 sps:$4 sm:$0xff]  }
  0x24   :  { %v1286_v23 = vld [vmem:[#allocation5 + $0x48] ss:$16 sps:$4 sm:$0xff]   ;;  %v1287_v24 = vld [vmem:[#allocation5 + $0x24] ss:$16 sps:$4 sm:$0xff]   ;;  %v1289_v25 = vld [vmem:[#allocation5 + $0x2c] ss:$16 sps:$4 sm:$0xff]  }
  0x25   :  { %v1291_v26 = vld [vmem:[#allocation5 + $0x20] ss:$16 sps:$4 sm:$0xff]   ;;  %v1292_v27 = vld [vmem:[#allocation5 + $0x28] ss:$16 sps:$4 sm:$0xff]   ;;  %v1293_v28 = vld [vmem:[#allocation5 + $0x4] ss:$16 sps:$4 sm:$0xff]  }
  0x26   :  { %477 = vmatpush1.bf16.msra.mxu0 %v1267_v10  ;;  %590 = vmatpush1.bf16.msra.mxu1 %v1268_v11  ;;  %v1295_v29 = vld [vmem:[#allocation5 + $0xc] ss:$16 sps:$4 sm:$0xff]   ;;  %v1297_v30 = vld [vmem:[#allocation5] ss:$16 sps:$4 sm:$0xff]   ;;  %v1298_v31 = vld [vmem:[#allocation5 + $0x8] ss:$16 sps:$4 sm:$0xff]  }
  0x27   :  { %478 = vmatprep.subr.bf16.mxu0 %v1269_v12  ;;  %591 = vmatprep.subr.bf16.mxu1 %v1271_v13  ;;  %v1299_v32 = vld [vmem:[#allocation5 + $0x1e4] ss:$16 sps:$4 sm:$0xff]   ;;  %v1301_v33 = vld [vmem:[#allocation5 + $0x1ec] ss:$16 sps:$4 sm:$0xff]   ;;  %v1303_v34 = vld [vmem:[#allocation5 + $0x1e0] ss:$16 sps:$4 sm:$0xff]  }
  0x28   :  { %v1304_v35 = vld [vmem:[#allocation5 + $0x1e8] ss:$16 sps:$4 sm:$0xff]   ;;  %v1305_v36 = vld [vmem:[#allocation5 + $0x1c4] ss:$16 sps:$4 sm:$0xff]   ;;  %v1307_v37 = vld [vmem:[#allocation5 + $0x1cc] ss:$16 sps:$4 sm:$0xff]  }
  0x29   :  { %v1309_v38 = vld [vmem:[#allocation5 + $0x1c0] ss:$16 sps:$4 sm:$0xff]   ;;  %v1310_v39 = vld [vmem:[#allocation5 + $0x1c8] ss:$16 sps:$4 sm:$0xff]   ;;  %v1311_v40 = vld [vmem:[#allocation5 + $0x1a4] ss:$16 sps:$4 sm:$0xff]  }
  0x2a   :  { %479 = vmatpush1.bf16.msra.mxu0 %v1273_v14  ;;  %592 = vmatpush1.bf16.msra.mxu1 %v1274_v15  ;;  %v1313_v41 = vld [vmem:[#allocation5 + $0x1ac] ss:$16 sps:$4 sm:$0xff]   ;;  %v1315_v42 = vld [vmem:[#allocation5 + $0x1a0] ss:$16 sps:$4 sm:$0xff]   ;;  %v1316_v43 = vld [vmem:[#allocation5 + $0x1a8] ss:$16 sps:$4 sm:$0xff]  }
  0x2b   :  { %480 = vmatprep.subr.bf16.mxu0 %v1275_v16  ;;  %593 = vmatprep.subr.bf16.mxu1 %v1277_v17  ;;  %v1317_v44 = vld [vmem:[#allocation5 + $0x184] ss:$16 sps:$4 sm:$0xff]   ;;  %v1319_v45 = vld [vmem:[#allocation5 + $0x18c] ss:$16 sps:$4 sm:$0xff]   ;;  %v1321_v48 = vld [vmem:[#allocation5 + $0x180] ss:$16 sps:$4 sm:$0xff]  }
  0x2c   :  { %v41_v46 = vld [vmem:[#allocation2 + $0x8] sm:$0xff]  ;;  %v43_v47 = vld [vmem:[#allocation2 + $0x18] sm:$0xff]  ;;  %v1323_v51 = vld [vmem:[#allocation5 + $0x164] ss:$16 sps:$4 sm:$0xff]   ;;  %s1481_s0 = smov [#allocation7]  }
  0x2d   :  { %v1322_v49 = vld [vmem:[#allocation5 + $0x188] ss:$16 sps:$4 sm:$0xff]   ;;  %v73_v50 = vpack.c.bf16 %v43_v47, %v41_v46  ;;  %v1325_v52 = vld [vmem:[#allocation5 + $0x16c] ss:$16 sps:$4 sm:$0xff]   ;;  %v1327_v53 = vld [vmem:[#allocation5 + $0x160] ss:$16 sps:$4 sm:$0xff]  }
  0x2e   :  { %481 = vmatpush1.bf16.msra.mxu0 %v1279_v18  ;;  %594 = vmatpush1.bf16.msra.mxu1 %v1280_v19  ;;  %v1328_v54 = vld [vmem:[#allocation5 + $0x168] ss:$16 sps:$4 sm:$0xff]   ;;  %v1329_v55 = vld [vmem:[#allocation5 + $0x144] ss:$16 sps:$4 sm:$0xff]   ;;  %v1331_v56 = vld [vmem:[#allocation5 + $0x14c] ss:$16 sps:$4 sm:$0xff]  }
  0x2f   :  { %482 = vmatprep.subr.bf16.mxu0 %v1281_v20  ;;  %595 = vmatprep.subr.bf16.mxu1 %v1283_v21  ;;  %v1333_v57 = vld [vmem:[#allocation5 + $0x140] ss:$16 sps:$4 sm:$0xff]   ;;  %v1334_v58 = vld [vmem:[#allocation5 + $0x148] ss:$16 sps:$4 sm:$0xff]   ;;  %v1335_v59 = vld [vmem:[#allocation5 + $0x124] ss:$16 sps:$4 sm:$0xff]  }
  0x30   :  { %504 = vmatprep.mubr.bf16.mxu0 %v73_v50  ;;  %617 = vmatprep.mubr.bf16.mxu1 %v73_v50  ;;  %v1337_v60 = vld [vmem:[#allocation5 + $0x12c] ss:$16 sps:$4 sm:$0xff]   ;;  %v1339_v61 = vld [vmem:[#allocation5 + $0x120] ss:$16 sps:$4 sm:$0xff]   ;;  %v1340_v62 = vld [vmem:[#allocation5 + $0x128] ss:$16 sps:$4 sm:$0xff]  }
  0x31   :  { %v1341_v63 = vld [vmem:[#allocation5 + $0x104] ss:$16 sps:$4 sm:$0xff]   ;;  %v1343_v0 = vld [vmem:[#allocation5 + $0x10c] ss:$16 sps:$4 sm:$0xff]   ;;  %v1345_v1 = vld [vmem:[#allocation5 + $0x100] ss:$16 sps:$4 sm:$0xff]  }
  0x32   :  { %483 = vmatpush1.bf16.msra.mxu0 %v1285_v22  ;;  %596 = vmatpush1.bf16.msra.mxu1 %v1286_v23  ;;  %v1346_v2 = vld [vmem:[#allocation5 + $0x108] ss:$16 sps:$4 sm:$0xff]   ;;  %v40_v3 = vld [vmem:[#allocation2] sm:$0xff]  ;;  %v42_v4 = vld [vmem:[#allocation2 + $0x10] sm:$0xff]  ;;  %s1135_s1 = sshll.u32 %s1481_s0, 4  ;;  %s1136_s1 = int_to_ptr.vmem [resolvable:$true] %s1135_s1 }
  0x33   :  { %484 = vmatprep.subr.bf16.mxu0 %v1287_v24  ;;  %597 = vmatprep.subr.bf16.mxu1 %v1289_v25  ;;  %v45_v5 = vld [vmem:[#allocation2 + $0x28] sm:$0xff]  ;;  %v47_v6 = vld [vmem:[#allocation2 + $0x38] sm:$0xff]  ;;  %v72_v7 = vpack.c.bf16 %v42_v4, %v40_v3  ;;  %v44_v9 = vld [vmem:[#allocation2 + $0x20] sm:$0xff]  ;;  %s1451_s21 = scalar_lea.vmem %s1136_s1, 2048  ;;  %p1456_p11 = scmp.lt.s32.totalorder %s1136_s1, %s1136_s1 }
  0x34   :  { %v75_v8 = vpack.c.bf16 %v47_v6, %v45_v5  ;;  %v46_v10 = vld [vmem:[#allocation2 + $0x30] sm:$0xff]  ;;  %v49_v11 = vld [vmem:[#allocation2 + $0x48] sm:$0xff]  ;;  %v51_v12 = vld [vmem:[#allocation2 + $0x58] sm:$0xff]  ;;  %p1452_p10 = scmp.ne.s32.totalorder %s1136_s1, %s1451_s21  ;;  %p1457_p12 = scmp.lt.s32.totalorder %s1451_s21, %s1451_s21 }
  0x35   :  { %v74_v13 = vpack.c.bf16 %v46_v10, %v44_v9  ;;  %v77_v14 = vpack.c.bf16 %v51_v12, %v49_v11  ;;  %v48_v15 = vld [vmem:[#allocation2 + $0x40] sm:$0xff]  ;;  %v50_v16 = vld [vmem:[#allocation2 + $0x50] sm:$0xff]  ;;  %v53_v17 = vld [vmem:[#allocation2 + $0x68] sm:$0xff] }
  0x36   :  { %485 = vmatpush1.bf16.msra.mxu0 %v1291_v26  ;;  %598 = vmatpush1.bf16.msra.mxu1 %v1292_v27  ;;  %v55_v18 = vld [vmem:[#allocation2 + $0x78] sm:$0xff]  ;;  %v76_v19 = vpack.c.bf16 %v50_v16, %v48_v15  ;;  %v52_v21 = vld [vmem:[#allocation2 + $0x60] sm:$0xff]  ;;  %v54_v22 = vld [vmem:[#allocation2 + $0x70] sm:$0xff]  ;;  %p1458_p13 = por %p1457_p12, %p1456_p11 }
  0x37   :  { %486 = vmatprep.subr.bf16.mxu0 %v1293_v28  ;;  %599 = vmatprep.subr.bf16.mxu1 %v1295_v29  ;;  %v79_v20 = vpack.c.bf16 %v55_v18, %v53_v17  ;;  %v57_v23 = vld [vmem:[#allocation2 + $0x88] sm:$0xff]  ;;  %v59_v24 = vld [vmem:[#allocation2 + $0x98] sm:$0xff]  ;;  %v78_v25 = vpack.c.bf16 %v54_v22, %v52_v21  ;;  %v56_v27 = vld [vmem:[#allocation2 + $0x80] sm:$0xff] }
  0x38   :  { %v81_v26 = vpack.c.bf16 %v59_v24, %v57_v23  ;;  %v58_v28 = vld [vmem:[#allocation2 + $0x90] sm:$0xff]  ;;  %v61_v29 = vld [vmem:[#allocation2 + $0xa8] sm:$0xff]  ;;  %p1459_p0 = pnand %p1458_p13, %p1452_p10 }
  0x39   :  { %v70_v46 = vld [vmem:[#allocation2 + $0xf0] sm:$0xff] }
  0x3a   :  { %487 = vmatpush1.bf16.msra.mxu0 %v1297_v30  ;;  %600 = vmatpush1.bf16.msra.mxu1 %v1298_v31  ;;  %v63_v30 = vld [vmem:[#allocation2 + $0xb8] sm:$0xff]  ;;  %v80_v31 = vpack.c.bf16 %v58_v28, %v56_v27 }
  0x3b   :  { %488 = vmatprep.subr.bf16.mxu0 %v1299_v32  ;;  %601 = vmatprep.subr.bf16.mxu1 %v1301_v33  ;;  %v83_v32 = vpack.c.bf16 %v63_v30, %v61_v29  ;;  %v60_v33 = vld [vmem:[#allocation2 + $0xa0] sm:$0xff] }
  0x3e   :  { %489 = vmatpush2.bf16.msra.mxu0 %v1303_v34  ;;  %602 = vmatpush2.bf16.msra.mxu1 %v1304_v35  ;;  %v62_v34 = vld [vmem:[#allocation2 + $0xb0] sm:$0xff]  ;;  %v65_v35 = vld [vmem:[#allocation2 + $0xc8] sm:$0xff] }
  0x3f   :  { %490 = vmatprep.subr.bf16.mxu0 %v1305_v36  ;;  %603 = vmatprep.subr.bf16.mxu1 %v1307_v37  ;;  %v67_v36 = vld [vmem:[#allocation2 + $0xd8] sm:$0xff]  ;;  %v82_v37 = vpack.c.bf16 %v62_v34, %v60_v33 }
  0x42   :  { %491 = vmatpush2.bf16.msra.mxu0 %v1309_v38  ;;  %604 = vmatpush2.bf16.msra.mxu1 %v1310_v39  ;;  %v85_v38 = vpack.c.bf16 %v67_v36, %v65_v35  ;;  %v64_v39 = vld [vmem:[#allocation2 + $0xc0] sm:$0xff] }
  0x43   :  { %492 = vmatprep.subr.bf16.mxu0 %v1311_v40  ;;  %605 = vmatprep.subr.bf16.mxu1 %v1313_v41  ;;  %v66_v40 = vld [vmem:[#allocation2 + $0xd0] sm:$0xff]  ;;  %v69_v41 = vld [vmem:[#allocation2 + $0xe8] sm:$0xff] }
  0x46   :  { %493 = vmatpush2.bf16.msra.mxu0 %v1315_v42  ;;  %606 = vmatpush2.bf16.msra.mxu1 %v1316_v43  ;;  %v71_v42 = vld [vmem:[#allocation2 + $0xf8] sm:$0xff]  ;;  %v84_v43 = vpack.c.bf16 %v66_v40, %v64_v39 }
  0x47   :  { %494 = vmatprep.subr.bf16.mxu0 %v1317_v44  ;;  %607 = vmatprep.subr.bf16.mxu1 %v1319_v45  ;;  %v87_v44 = vpack.c.bf16 %v71_v42, %v69_v41  ;;  %v68_v45 = vld [vmem:[#allocation2 + $0xe0] sm:$0xff] }
  0x48   :  { %v86_v47 = vpack.c.bf16 %v70_v46, %v68_v45 }
  0x4a   :  { %495 = vmatpush2.bf16.msra.mxu0 %v1321_v48  ;;  %608 = vmatpush2.bf16.msra.mxu1 %v1322_v49 }
  0x4b   :  { %496 = vmatprep.subr.bf16.mxu0 %v1323_v51  ;;  %609 = vmatprep.subr.bf16.mxu1 %v1325_v52 }
  0x4e   :  { %497 = vmatpush2.bf16.msra.mxu0 %v1327_v53  ;;  %610 = vmatpush2.bf16.msra.mxu1 %v1328_v54 }
  0x4f   :  { %498 = vmatprep.subr.bf16.mxu0 %v1329_v55  ;;  %611 = vmatprep.subr.bf16.mxu1 %v1331_v56 }
  0x52   :  { %499 = vmatpush2.bf16.msra.mxu0 %v1333_v57  ;;  %612 = vmatpush2.bf16.msra.mxu1 %v1334_v58 }
  0x53   :  { %500 = vmatprep.subr.bf16.mxu0 %v1335_v59  ;;  %613 = vmatprep.subr.bf16.mxu1 %v1337_v60 }
  0x56   :  { %501 = vmatpush2.bf16.msra.mxu0 %v1339_v61  ;;  %614 = vmatpush2.bf16.msra.mxu1 %v1340_v62 }
  0x57   :  { %502 = vmatprep.subr.bf16.mxu0 %v1341_v63  ;;  %615 = vmatprep.subr.bf16.mxu1 %v1343_v0 }
  0x5a   :  { %503 = vmatpush2.bf16.msra.mxu0 %v1345_v1  ;;  %616 = vmatpush2.bf16.msra.mxu1 %v1346_v2 }
  0x5d   :  { %505 = vmatmul.mubr.bf16.vlgmr.msra.gmra.mxu0 %v72_v7  ;;  %618 = vmatmul.mubr.bf16.vlgmr.msra.gmra.mxu1 %v72_v7 }
  0x5e   :  { %514 = vmatprep.mubr.bf16.mxu0 %v75_v8  ;;  %627 = vmatprep.mubr.bf16.mxu1 %v75_v8 }
  0x65   :  { %515 = vmatmul.mubr.bf16.gmra.mxu0 %v74_v13  ;;  %628 = vmatmul.mubr.bf16.gmra.mxu1 %v74_v13 }
  0x66   :  { %524 = vmatprep.mubr.bf16.mxu0 %v77_v14  ;;  %637 = vmatprep.mubr.bf16.mxu1 %v77_v14 }
  0x6d   :  { %525 = vmatmul.mubr.bf16.gmra.mxu0 %v76_v19  ;;  %638 = vmatmul.mubr.bf16.gmra.mxu1 %v76_v19 }
  0x6e   :  { %534 = vmatprep.mubr.bf16.mxu0 %v79_v20  ;;  %647 = vmatprep.mubr.bf16.mxu1 %v79_v20 }
  0x75   :  { %535 = vmatmul.mubr.bf16.gmra.mxu0 %v78_v25  ;;  %648 = vmatmul.mubr.bf16.gmra.mxu1 %v78_v25 }
  0x76   :  { %544 = vmatprep.mubr.bf16.mxu0 %v81_v26  ;;  %657 = vmatprep.mubr.bf16.mxu1 %v81_v26 }
  0x7d   :  { %545 = vmatmul.mubr.bf16.gmra.mxu0 %v80_v31  ;;  %658 = vmatmul.mubr.bf16.gmra.mxu1 %v80_v31 }
  0x7e   :  { %554 = vmatprep.mubr.bf16.mxu0 %v83_v32  ;;  %667 = vmatprep.mubr.bf16.mxu1 %v83_v32 }
  0x85   :  { %555 = vmatmul.mubr.bf16.gmra.mxu0 %v82_v37  ;;  %668 = vmatmul.mubr.bf16.gmra.mxu1 %v82_v37 }
  0x86   :  { %564 = vmatprep.mubr.bf16.mxu0 %v85_v38  ;;  %677 = vmatprep.mubr.bf16.mxu1 %v85_v38 }
  0x8d   :  { %565 = vmatmul.mubr.bf16.gmra.mxu0 %v84_v43  ;;  %678 = vmatmul.mubr.bf16.gmra.mxu1 %v84_v43 }
  0x8e   :  { %574 = vmatprep.mubr.bf16.mxu0 %v87_v44  ;;  %687 = vmatprep.mubr.bf16.mxu1 %v87_v44 }
  0x95   :  { %575 = vmatmul.mubr.bf16.gmra.mxu0 %v86_v47  ;;  %688 = vmatmul.mubr.bf16.gmra.mxu1 %v86_v47 }
 0x11d   :  { %v506_v48 = vpop.f32.mrf.mxu0  ;;  %v619_v49 = vpop.f32.mrf.mxu1 }
 0x11e   :  { %v698_v50 = vmul.f32 %v506_v48, %v506_v48  ;;  %v730_v51 = vmul.f32 %v619_v49, %v619_v49 }
 0x11f   :  { %v508_v52 = vpop.f32.mrf.mxu0  ;;  %v621_v53 = vpop.f32.mrf.mxu1 }
 0x120   :  { %v1505_v54 = vadd.f32 %v730_v51, %v698_v50  ;;  %v699_v55 = vmul.f32 %v508_v52, %v508_v52  ;;  %v731_v56 = vmul.f32 %v621_v53, %v621_v53 }
 0x121   :  { %v510_v57 = vpop.f32.mrf.mxu0  ;;  %v623_v58 = vpop.f32.mrf.mxu1 }
 0x122   :  { %1347 = vrsqrt.f32 %v1505_v54  ;;  %v1508_v59 = vadd.f32 %v731_v56, %v699_v55  ;;  %v700_v60 = vmul.f32 %v510_v57, %v510_v57  ;;  %v732_v61 = vmul.f32 %v623_v58, %v623_v58 }
 0x123   :  { %v512_v62 = vpop.f32.mrf.mxu0  ;;  %v625_v63 = vpop.f32.mrf.mxu1  ;;  %vm796_vm0 = vcmp.eq.f32.partialorder %v1505_v54, inf  ;;  %vm798_vm1 = vcmp.eq.f32.partialorder %v1505_v54, 0.0  ;;  %v799_v31 = vand.u32 2147483648, %v1505_v54 }
 0x124   :  { %v701_v0 = vmul.f32 %v512_v62, %v512_v62  ;;  %v733_v1 = vmul.f32 %v625_v63, %v625_v63  ;;  %1349 = vrsqrt.f32 %v1508_v59  ;;  %v1511_v4 = vadd.f32 %v732_v61, %v700_v60 }
 0x125   :  { %v516_v2 = vpop.f32.mrf.mxu0  ;;  %v629_v3 = vpop.f32.mrf.mxu1  ;;  %vm803_vm2 = vcmp.eq.f32.partialorder %v1508_v59, inf  ;;  %vm805_vm3 = vcmp.eq.f32.partialorder %v1508_v59, 0.0  ;;  %v806_v38 = vand.u32 2147483648, %v1508_v59 }
 0x126   :  { %v1513_v5 = vadd.f32 %v733_v1, %v701_v0  ;;  %v702_v6 = vmul.f32 %v516_v2, %v516_v2  ;;  %v734_v7 = vmul.f32 %v629_v3, %v629_v3  ;;  %1351 = vrsqrt.f32 %v1511_v4 }
 0x127   :  { %v518_v8 = vpop.f32.mrf.mxu0  ;;  %v631_v9 = vpop.f32.mrf.mxu1  ;;  %vm810_vm4 = vcmp.eq.f32.partialorder %v1511_v4, inf  ;;  %vm812_vm5 = vcmp.eq.f32.partialorder %v1511_v4, 0.0  ;;  %v813_v46 = vand.u32 2147483648, %v1511_v4 }
 0x128   :  { %1353 = vrsqrt.f32 %v1513_v5  ;;  %v1517_v12 = vadd.f32 %v734_v7, %v702_v6  ;;  %v703_v13 = vmul.f32 %v518_v8, %v518_v8  ;;  %v735_v14 = vmul.f32 %v631_v9, %v631_v9 }
 0x129   :  { %v520_v10 = vpop.f32.mrf.mxu0  ;;  %v633_v11 = vpop.f32.mrf.mxu1  ;;  %vm817_vm6 = vcmp.eq.f32.partialorder %v1513_v5, inf  ;;  %vm819_vm7 = vcmp.eq.f32.partialorder %v1513_v5, 0.0  ;;  %v820_v49 = vand.u32 2147483648, %v1513_v5 }
 0x12a   :  { %v704_v15 = vmul.f32 %v520_v10, %v520_v10  ;;  %v736_v16 = vmul.f32 %v633_v11, %v633_v11  ;;  %1355 = vrsqrt.f32 %v1517_v12  ;;  %v1520_v19 = vadd.f32 %v735_v14, %v703_v13 }
 0x12b   :  { %v522_v17 = vpop.f32.mrf.mxu0  ;;  %v635_v18 = vpop.f32.mrf.mxu1  ;;  %vm824_vm8 = vcmp.eq.f32.partialorder %v1517_v12, inf  ;;  %vm826_vm9 = vcmp.eq.f32.partialorder %v1517_v12, 0.0  ;;  %v827_v2 = vand.u32 2147483648, %v1517_v12 }
 0x12c   :  { %v1522_v20 = vadd.f32 %v736_v16, %v704_v15  ;;  %v705_v21 = vmul.f32 %v522_v17, %v522_v17  ;;  %v737_v22 = vmul.f32 %v635_v18, %v635_v18  ;;  %1357 = vrsqrt.f32 %v1520_v19 }
 0x12d   :  { %v526_v23 = vpop.f32.mrf.mxu0  ;;  %v639_v24 = vpop.f32.mrf.mxu1  ;;  %vm831_vm10 = vcmp.eq.f32.partialorder %v1520_v19, inf  ;;  %vm833_vm11 = vcmp.eq.f32.partialorder %v1520_v19, 0.0  ;;  %v834_v13 = vand.u32 2147483648, %v1520_v19 }
 0x12e   :  { %v706_v25 = vmul.f32 %v526_v23, %v526_v23  ;;  %v738_v26 = vmul.f32 %v639_v24, %v639_v24  ;;  %1359 = vrsqrt.f32 %v1522_v20  ;;  %v1532_v32 = vadd.f32 %v737_v22, %v705_v21 }
 0x12f   :  { %v1348_v27 = vpop.eup %1347  ;;  %v528_v28 = vpop.f32.mrf.mxu0  ;;  %vm838_vm12 = vcmp.eq.f32.partialorder %v1522_v20, inf  ;;  %vm840_vm13 = vcmp.eq.f32.partialorder %v1522_v20, 0.0 }
 0x130   :  { %v641_v29 = vpop.f32.mrf.mxu1  ;;  %v795_v30 = vmul.f32 %v1348_v27, %v1505_v54  ;;  %v1534_v33 = vadd.f32 %v738_v26, %v706_v25  ;;  %v707_v34 = vmul.f32 %v528_v28, %v528_v28  ;;  %1361 = vrsqrt.f32 %v1532_v32 }
 0x131   :  { %v530_v35 = vpop.f32.mrf.mxu0  ;;  %v1350_v37 = vpop.eup %1349  ;;  %v739_v39 = vmul.f32 %v641_v29, %v641_v29  ;;  %vm845_vm14 = vcmp.eq.f32.partialorder %v1532_v32, inf  ;;  %vm847_vm15 = vcmp.eq.f32.partialorder %v1532_v32, 0.0 }
 0x132   :  { %v643_v36 = vpop.f32.mrf.mxu1  ;;  %v708_v40 = vmul.f32 %v530_v35, %v530_v35  ;;  %v797_v42 = vsel %vm796_vm0, %v1505_v54, %v795_v30  ;;  %v802_v43 = vmul.f32 %v1350_v37, %v1508_v59  ;;  %1363 = vrsqrt.f32 %v1534_v33 }
 0x133   :  { %v740_v41 = vmul.f32 %v643_v36, %v643_v36  ;;  %v532_v44 = vpop.f32.mrf.mxu0  ;;  %v1352_v47 = vpop.eup %1351  ;;  %v1552_v50 = vadd.f32 %v739_v39, %v707_v34  ;;  %v800_v55 = vsel %vm798_vm1, %v799_v31, %v797_v42  ;;  %v841_v34 = vand.u32 2147483648, %v1522_v20 }
 0x134   :  { %v645_v45 = vpop.f32.mrf.mxu1  ;;  %v804_v48 = vsel %vm803_vm2, %v1508_v59, %v802_v43  ;;  %v809_v57 = vmul.f32 %v1352_v47, %v1511_v4  ;;  %v709_v59 = vmul.f32 %v532_v44, %v532_v44  ;;  %vm852_vm0 = vcmp.eq.f32.partialorder %v1534_v33, inf }
 0x135   :  { %v536_v51 = vpop.f32.mrf.mxu0  ;;  %v1354_v53 = vpop.eup %1353  ;;  %v807_v56 = vsel %vm805_vm3, %v806_v38, %v804_v48  ;;  %v1559_v58 = vadd.f32 %v740_v41, %v708_v40  ;;  %1365 = vrsqrt.f32 %v1552_v50  ;;  %v741_v10 = vmul.f32 %v645_v45, %v645_v45 }
 0x136   :  { %v649_v52 = vpop.f32.mrf.mxu1  ;;  %v1228_v60 = vpack.c.bf16 %v807_v56, %v800_v55  ;;  %v816_v61 = vmul.f32 %v1354_v53, %v1513_v5  ;;  %v811_v54 = vsel %vm810_vm4, %v1511_v4, %v809_v57  ;;  %v710_v14 = vmul.f32 %v536_v51, %v536_v51 }
 0x137   :  { %v538_v62 = vpop.f32.mrf.mxu0  ;;  %1367 = vrsqrt.f32 %v1559_v58  ;;  %v1356_v0 = vpop.eup %1355  ;;  %v814_v7 = vsel %vm812_vm5, %v813_v46, %v811_v54  ;;  %v742_v15 = vmul.f32 %v649_v52, %v649_v52  ;;  %v1583_v4 = vadd.f32 %v741_v10, %v709_v59 }
 0x138   :  { %v651_v63 = vpop.f32.mrf.mxu1  ;;  %1114 = vst [vmem:[#allocation7] sm:$0xff] %v1228_v60  ;;  %v818_v1 = vsel %vm817_vm6, %v1513_v5, %v816_v61  ;;  %v823_v9 = vmul.f32 %v1356_v0, %v1517_v12  ;;  %v711_v21 = vmul.f32 %v538_v62, %v538_v62  ;;  %v848_v40 = vand.u32 2147483648, %v1532_v32 }
 0x139   :  { %v540_v3 = vpop.f32.mrf.mxu0  ;;  %v821_v8 = vsel %vm819_vm7, %v820_v49, %v818_v1  ;;  %v1358_v18 = vpop.eup %1357  ;;  %v1589_v24 = vadd.f32 %v742_v15, %v710_v14  ;;  %v743_v25 = vmul.f32 %v651_v63, %v651_v63  ;;  %1369 = vrsqrt.f32 %v1583_v4 }
 0x13a   :  { %v653_v6 = vpop.f32.mrf.mxu1  ;;  %v1229_v11 = vpack.c.bf16 %v821_v8, %v814_v7  ;;  %v825_v22 = vsel %vm824_vm8, %v1517_v12, %v823_v9  ;;  %v830_v23 = vmul.f32 %v1358_v18, %v1520_v19  ;;  %v712_v29 = vmul.f32 %v540_v3, %v540_v3 }
 0x13b   :  { %v542_v16 = vpop.f32.mrf.mxu0  ;;  %v1360_v5 = vpop.eup %1359  ;;  %v744_v30 = vmul.f32 %v653_v6, %v653_v6  ;;  %1371 = vrsqrt.f32 %v1589_v24  ;;  %v828_v38 = vsel %vm826_vm9, %v827_v2, %v825_v22  ;;  %v1609_v45 = vadd.f32 %v743_v25, %v711_v21 }
 0x13c   :  { %v655_v17 = vpop.f32.mrf.mxu1  ;;  %1115 = vst [vmem:[#allocation7 + $0x8] sm:$0xff] %v1229_v11  ;;  %v837_v28 = vmul.f32 %v1360_v5, %v1522_v20  ;;  %v832_v31 = vsel %vm831_vm10, %v1520_v19, %v830_v23  ;;  %v713_v48 = vmul.f32 %v542_v16, %v542_v16  ;;  %vm854_vm1 = vcmp.eq.f32.partialorder %v1534_v33, 0.0 }
 0x13d   :  { %v546_v26 = vpop.f32.mrf.mxu0  ;;  %v1362_v37 = vpop.eup %1361  ;;  %v835_v39 = vsel %vm833_vm11, %v834_v13, %v832_v31  ;;  %v1612_v19 = vadd.f32 %v744_v30, %v712_v29  ;;  %v745_v49 = vmul.f32 %v655_v17, %v655_v17  ;;  %1373 = vrsqrt.f32 %v1609_v45 }
 0x13e   :  { %v659_v27 = vpop.f32.mrf.mxu1  ;;  %v1230_v42 = vpack.c.bf16 %v835_v39, %v828_v38  ;;  %v839_v43 = vsel %vm838_vm12, %v1522_v20, %v837_v28  ;;  %v844_v44 = vmul.f32 %v1362_v37, %v1532_v32  ;;  %v855_v60 = vand.u32 2147483648, %v1534_v33 }
 0x13f   :  { %v548_v35 = vpop.f32.mrf.mxu0  ;;  %v1364_v41 = vpop.eup %1363  ;;  %v842_v56 = vsel %vm840_vm13, %v841_v34, %v839_v43  ;;  %1375 = vrsqrt.f32 %v1612_v19  ;;  %vm859_vm2 = vcmp.eq.f32.partialorder %v1552_v50, inf  ;;  %vm861_vm3 = vcmp.eq.f32.partialorder %v1552_v50, 0.0 }
 0x140   :  { %v661_v36 = vpop.f32.mrf.mxu1  ;;  %v851_v47 = vmul.f32 %v1364_v41, %v1534_v33  ;;  %1116 = vst [vmem:[#allocation7 + $0x10] sm:$0xff] %v1230_v42  ;;  %v846_v51 = vsel %vm845_vm14, %v1532_v32, %v844_v44  ;;  %v862_v20 = vand.u32 2147483648, %v1552_v50  ;;  %vm866_vm4 = vcmp.eq.f32.partialorder %v1559_v58, inf }
 0x141   :  { %v550_v46 = vpop.f32.mrf.mxu0  ;;  %v849_v57 = vsel %vm847_vm15, %v848_v40, %v846_v51  ;;  %v1632_v32 = vadd.f32 %v745_v49, %v713_v48  ;;  %vm868_vm5 = vcmp.eq.f32.partialorder %v1559_v58, 0.0  ;;  %v714_v2 = vmul.f32 %v546_v26, %v546_v26 }
 0x142   :  { %v663_v12 = vpop.f32.mrf.mxu1  ;;  %v1366_v55 = vpop.eup %1365  ;;  %v1231_v62 = vpack.c.bf16 %v849_v57, %v842_v56  ;;  %v853_v63 = vsel %vm852_vm0, %v1534_v33, %v851_v47  ;;  %v746_v3 = vmul.f32 %v659_v27, %v659_v27  ;;  %v869_v13 = vand.u32 2147483648, %v1559_v58 }
 0x143   :  { %v552_v52 = vpop.f32.mrf.mxu0  ;;  %v858_v54 = vmul.f32 %v1366_v55, %v1552_v50  ;;  %v856_v8 = vsel %vm854_vm1, %v855_v60, %v853_v63  ;;  %1377 = vrsqrt.f32 %v1632_v32  ;;  %vm873_vm6 = vcmp.eq.f32.partialorder %v1583_v4, inf }
 0x144   :  { %v665_v53 = vpop.f32.mrf.mxu1  ;;  %v1368_v61 = vpop.eup %1367  ;;  %1117 = vst [vmem:[#allocation7 + $0x18] sm:$0xff] %v1231_v62  ;;  %v1648_v16 = vadd.f32 %v746_v3, %v714_v2  ;;  %v747_v17 = vmul.f32 %v661_v36, %v661_v36  ;;  %v716_v33 = vmul.f32 %v550_v46, %v550_v46  ;;  %v748_v18 = vmul.f32 %v663_v12, %v663_v12 }
 0x145   :  { %v556_v59 = vpop.f32.mrf.mxu0  ;;  %v860_v1 = vsel %vm859_vm2, %v1552_v50, %v858_v54  ;;  %v865_v10 = vmul.f32 %v1368_v61, %v1559_v58  ;;  %v715_v50 = vmul.f32 %v548_v35, %v548_v35  ;;  %v717_v5 = vmul.f32 %v552_v52, %v552_v52 }
 0x146   :  { %v669_v0 = vpop.f32.mrf.mxu1  ;;  %v863_v9 = vsel %vm861_vm3, %v862_v20, %v860_v1  ;;  %v1370_v21 = vpop.eup %1369  ;;  %v749_v22 = vmul.f32 %v665_v53, %v665_v53  ;;  %v718_v23 = vmul.f32 %v556_v59, %v556_v59  ;;  %vm875_vm7 = vcmp.eq.f32.partialorder %v1583_v4, 0.0 }
 0x147   :  { %v558_v6 = vpop.f32.mrf.mxu0  ;;  %v1232_v11 = vpack.c.bf16 %v863_v9, %v856_v8  ;;  %v750_v25 = vmul.f32 %v669_v0, %v669_v0  ;;  %v867_v29 = vsel %vm866_vm4, %v1559_v58, %v865_v10  ;;  %v872_v30 = vmul.f32 %v1370_v21, %v1583_v4 }
 0x148   :  { %v1636_v7 = vpop.f32.mrf.mxu1  ;;  %v1372_v28 = vpop.eup %1371  ;;  %1379 = vrsqrt.f32 %v1648_v16  ;;  %v876_v31 = vand.u32 2147483648, %v1583_v4  ;;  %v1658_v35 = vadd.f32 %v747_v17, %v715_v50  ;;  %v1660_v36 = vadd.f32 %v748_v18, %v716_v33 }
 0x149   :  { %v1644_v14 = vpop.f32.mrf.mxu0  ;;  %1118 = vst [vmem:[#allocation7 + $0x20] sm:$0xff] %v1232_v11  ;;  %v879_v34 = vmul.f32 %v1372_v28, %v1589_v24  ;;  %v874_v38 = vsel %vm873_vm6, %v1583_v4, %v872_v30  ;;  %vm880_vm8 = vcmp.eq.f32.partialorder %v1589_v24, inf  ;;  %vm882_vm9 = vcmp.eq.f32.partialorder %v1589_v24, 0.0 }
 0x14a   :  { %v1646_v15 = vpop.f32.mrf.mxu1  ;;  %v1667_v39 = vadd.f32 %v749_v22, %v717_v5  ;;  %v870_v41 = vsel %vm868_vm5, %v869_v13, %v867_v29  ;;  %v877_v42 = vsel %vm875_vm7, %v876_v31, %v874_v38  ;;  %1381 = vrsqrt.f32 %v1658_v35  ;;  %v1374_v44 = vpop.eup %1373 }
 0x14b   :  { %v562_v26 = vpop.f32.mrf.mxu0  ;;  %v1672_v43 = vadd.f32 %v750_v25, %v718_v23  ;;  %v1233_v46 = vpack.c.bf16 %v877_v42, %v870_v41  ;;  %v883_v12 = vand.u32 2147483648, %v1589_v24  ;;  %vm887_vm10 = vcmp.eq.f32.partialorder %v1609_v45, inf }
 0x14c   :  { %v675_v27 = vpop.f32.mrf.mxu1  ;;  %vm889_vm11 = vcmp.eq.f32.partialorder %v1609_v45, 0.0  ;;  %v1376_v4 = vpop.eup %1375  ;;  %v881_v47 = vsel %vm880_vm8, %v1589_v24, %v879_v34  ;;  %v886_v48 = vmul.f32 %v1374_v44, %v1609_v45  ;;  %v890_v58 = vand.u32 2147483648, %v1609_v45 }
 0x14d   :  { %v566_v37 = vpop.f32.mrf.mxu0  ;;  %1383 = vrsqrt.f32 %v1660_v36  ;;  %1119 = vst [vmem:[#allocation7 + $0x28] sm:$0xff] %v1233_v46  ;;  %v893_v51 = vmul.f32 %v1376_v4, %v1612_v19  ;;  %vm894_vm12 = vcmp.eq.f32.partialorder %v1612_v19, inf  ;;  %vm896_vm13 = vcmp.eq.f32.partialorder %v1612_v19, 0.0 }
 0x14e   :  { %v679_v40 = vpop.f32.mrf.mxu1  ;;  %1385 = vrsqrt.f32 %v1667_v39  ;;  %v888_v53 = vsel %vm887_vm10, %v1609_v45, %v886_v48  ;;  %v897_v55 = vand.u32 2147483648, %v1612_v19  ;;  %v719_v56 = vmul.f32 %v558_v6, %v558_v6 }
 0x14f   :  { %v568_v49 = vpop.f32.mrf.mxu0  ;;  %1387 = vrsqrt.f32 %v1672_v43  ;;  %v884_v57 = vsel %vm882_vm9, %v883_v12, %v881_v47  ;;  %v891_v60 = vsel %vm889_vm11, %v890_v58, %v888_v53  ;;  %vm901_vm14 = vcmp.eq.f32.partialorder %v1632_v32, inf }
 0x150   :  { %v681_v52 = vpop.f32.mrf.mxu1  ;;  %vm903_vm15 = vcmp.eq.f32.partialorder %v1632_v32, 0.0  ;;  %v1378_v61 = vpop.eup %1377  ;;  %v1234_v62 = vpack.c.bf16 %v891_v60, %v884_v57  ;;  %v895_v63 = vsel %vm894_vm12, %v1612_v19, %v893_v51  ;;  %v904_v54 = vand.u32 2147483648, %v1632_v32 }
 0x151   :  { %v751_v59 = vmul.f32 %v1636_v7, %v1636_v7  ;;  %v570_v0 = vpop.f32.mrf.mxu0  ;;  %v900_v24 = vmul.f32 %v1378_v61, %v1632_v32  ;;  %v720_v45 = vmul.f32 %v1644_v14, %v1644_v14  ;;  %v752_v20 = vmul.f32 %v1646_v15, %v1646_v15 }
 0x152   :  { %v721_v1 = vmul.f32 %v562_v26, %v562_v26  ;;  %v683_v2 = vpop.f32.mrf.mxu1  ;;  %1120 = vst [vmem:[#allocation7 + $0x30] sm:$0xff] %v1234_v62  ;;  %v753_v6 = vmul.f32 %v675_v27, %v675_v27  ;;  %v722_v8 = vmul.f32 %v566_v37, %v566_v37  ;;  %v754_v9 = vmul.f32 %v679_v40, %v679_v40 }
 0x153   :  { %v1703_v3 = vadd.f32 %v751_v59, %v719_v56  ;;  %v902_v7 = vsel %vm901_vm14, %v1632_v32, %v900_v24  ;;  %v1708_v10 = vadd.f32 %v752_v20, %v720_v45  ;;  %v723_v11 = vmul.f32 %v568_v49, %v568_v49  ;;  %v572_v17 = vpop.f32.mrf.mxu0 }
 0x154   :  { %v755_v13 = vmul.f32 %v681_v52, %v681_v52  ;;  %v898_v14 = vsel %vm896_vm13, %v897_v55, %v895_v63  ;;  %v905_v15 = vsel %vm903_vm15, %v904_v54, %v902_v7  ;;  %vm908_vm0 = vcmp.eq.f32.partialorder %v1648_v16, inf  ;;  %v685_v21 = vpop.f32.mrf.mxu1 }
 0x155   :  { %v1380_v50 = vpop.eup %1379  ;;  %1389 = vrsqrt.f32 %v1703_v3  ;;  %v1235_v33 = vpack.c.bf16 %v905_v15, %v898_v14  ;;  %vm910_vm1 = vcmp.eq.f32.partialorder %v1648_v16, 0.0  ;;  %v911_v5 = vand.u32 2147483648, %v1648_v16  ;;  %v576_v28 = vpop.f32.mrf.mxu0 }
 0x156   :  { %v907_v18 = vmul.f32 %v1380_v50, %v1648_v16  ;;  %1391 = vrsqrt.f32 %v1708_v10  ;;  %vm915_vm2 = vcmp.eq.f32.partialorder %v1658_v35, inf  ;;  %vm917_vm3 = vcmp.eq.f32.partialorder %v1658_v35, 0.0  ;;  %v689_v31 = vpop.f32.mrf.mxu1 }
 0x157   :  { %v1722_v19 = vadd.f32 %v753_v6, %v721_v1  ;;  %v1382_v32 = vpop.eup %1381  ;;  %1121 = vst [vmem:[#allocation7 + $0x38] sm:$0xff] %v1235_v33  ;;  %v918_v22 = vand.u32 2147483648, %v1658_v35  ;;  %vm922_vm4 = vcmp.eq.f32.partialorder %v1660_v36, inf  ;;  %v1726_v23 = vadd.f32 %v754_v9, %v722_v8  ;;  %v578_v48 = vpop.f32.mrf.mxu0 }
 0x158   :  { %v1728_v25 = vadd.f32 %v755_v13, %v723_v11  ;;  %v909_v26 = vsel %vm908_vm0, %v1648_v16, %v907_v18  ;;  %v914_v27 = vmul.f32 %v1382_v32, %v1658_v35  ;;  %vm924_vm5 = vcmp.eq.f32.partialorder %v1660_v36, 0.0  ;;  %v691_v51 = vpop.f32.mrf.mxu1 }
 0x159   :  { %1393 = vrsqrt.f32 %v1722_v19  ;;  %v925_v30 = vand.u32 2147483648, %v1660_v36  ;;  %vm929_vm6 = vcmp.eq.f32.partialorder %v1667_v39, inf  ;;  %vm931_vm7 = vcmp.eq.f32.partialorder %v1667_v39, 0.0 }
 0x15a   :  { %v1384_v29 = vpop.eup %1383  ;;  %1395 = vrsqrt.f32 %v1726_v23  ;;  %v916_v37 = vsel %vm915_vm2, %v1658_v35, %v914_v27  ;;  %v932_v40 = vand.u32 2147483648, %v1667_v39  ;;  %v724_v41 = vmul.f32 %v570_v0, %v570_v0  ;;  %v580_v0 = vpop.f32.mrf.mxu0 }
 0x15b   :  { %v1386_v34 = vpop.eup %1385  ;;  %v921_v38 = vmul.f32 %v1384_v29, %v1660_v36  ;;  %v912_v44 = vsel %vm910_vm1, %v911_v5, %v909_v26  ;;  %v919_v46 = vsel %vm917_vm3, %v918_v22, %v916_v37  ;;  %1397 = vrsqrt.f32 %v1728_v25 }
 0x15c   :  { %v1388_v42 = vpop.eup %1387  ;;  %v928_v12 = vmul.f32 %v1386_v34, %v1667_v39  ;;  %v1236_v4 = vpack.c.bf16 %v919_v46, %v912_v44  ;;  %vm936_vm8 = vcmp.eq.f32.partialorder %v1672_v43, inf  ;;  %vm938_vm9 = vcmp.eq.f32.partialorder %v1672_v43, 0.0  ;;  %v582_v50 = vpop.f32.mrf.mxu0 }
 0x15d   :  { %v923_v47 = vsel %vm922_vm4, %v1660_v36, %v921_v38  ;;  %v935_v35 = vmul.f32 %v1388_v42, %v1672_v43  ;;  %v939_v58 = vand.u32 2147483648, %v1672_v43  ;;  %v756_v49 = vmul.f32 %v683_v2, %v683_v2 }
 0x15e   :  { %v930_v16 = vsel %vm929_vm6, %v1667_v39, %v928_v12  ;;  %1122 = vst [vmem:[#allocation7 + $0x40] sm:$0xff] %v1236_v4  ;;  %v926_v52 = vsel %vm924_vm5, %v925_v30, %v923_v47  ;;  %v725_v55 = vmul.f32 %v572_v17, %v572_v17  ;;  %v757_v56 = vmul.f32 %v685_v21, %v685_v21  ;;  %v693_v39 = vpop.f32.mrf.mxu1 }
 0x15f   :  { %v933_v53 = vsel %vm931_vm7, %v932_v40, %v930_v16  ;;  %vm943_vm10 = vcmp.eq.f32.partialorder %v1703_v3, inf  ;;  %v1766_v60 = vadd.f32 %v756_v49, %v724_v41  ;;  %v726_v61 = vmul.f32 %v576_v28, %v576_v28 }
 0x160   :  { %v1237_v57 = vpack.c.bf16 %v933_v53, %v926_v52  ;;  %v1768_v62 = vadd.f32 %v757_v56, %v725_v55  ;;  %v758_v63 = vmul.f32 %v689_v31, %v689_v31  ;;  %v727_v54 = vmul.f32 %v578_v48, %v578_v48  ;;  %v695_v22 = vpop.f32.mrf.mxu1 }
 0x161   :  { %v759_v59 = vmul.f32 %v691_v51, %v691_v51  ;;  %vm945_vm11 = vcmp.eq.f32.partialorder %v1703_v3, 0.0  ;;  %v946_v36 = vand.u32 2147483648, %v1703_v3  ;;  %vm950_vm12 = vcmp.eq.f32.partialorder %v1708_v10, inf }
 0x162   :  { %v1390_v24 = vpop.eup %1389  ;;  %1123 = vst [vmem:[#allocation7 + $0x48] sm:$0xff] %v1237_v57  ;;  %1399 = vrsqrt.f32 %v1766_v60  ;;  %v937_v20 = vsel %vm936_vm8, %v1672_v43, %v935_v35  ;;  %vm952_vm13 = vcmp.eq.f32.partialorder %v1708_v10, 0.0  ;;  %v953_v6 = vand.u32 2147483648, %v1708_v10 }
 0x163   :  { %v1392_v45 = vpop.eup %1391  ;;  %v942_v1 = vmul.f32 %v1390_v24, %v1703_v3  ;;  %1401 = vrsqrt.f32 %v1768_v62  ;;  %v1782_v8 = vadd.f32 %v758_v63, %v726_v61  ;;  %v1784_v9 = vadd.f32 %v759_v59, %v727_v54 }
 0x164   :  { %v949_v2 = vmul.f32 %v1392_v45, %v1708_v10  ;;  %vm957_vm14 = vcmp.eq.f32.partialorder %v1722_v19, inf  ;;  %v728_v11 = vmul.f32 %v580_v0, %v580_v0  ;;  %v760_v13 = vmul.f32 %v693_v39, %v693_v39 }
 0x165   :  { %v944_v7 = vsel %vm943_vm10, %v1703_v3, %v942_v1  ;;  %v940_v15 = vsel %vm938_vm9, %v939_v58, %v937_v20  ;;  %1403 = vrsqrt.f32 %v1782_v8  ;;  %vm959_vm15 = vcmp.eq.f32.partialorder %v1722_v19, 0.0 }
 0x166   :  { %v1394_v14 = vpop.eup %1393  ;;  %v947_v17 = vsel %vm945_vm11, %v946_v36, %v944_v7  ;;  %v951_v33 = vsel %vm950_vm12, %v1708_v10, %v949_v2  ;;  %v960_v32 = vand.u32 2147483648, %v1722_v19  ;;  %vm964_vm0 = vcmp.eq.f32.partialorder %v1726_v23, inf }
 0x167   :  { %v1396_v18 = vpop.eup %1395  ;;  %v1238_v21 = vpack.c.bf16 %v947_v17, %v940_v15  ;;  %v956_v5 = vmul.f32 %v1394_v14, %v1722_v19  ;;  %1405 = vrsqrt.f32 %v1784_v9  ;;  %v729_v3 = vmul.f32 %v582_v50, %v582_v50 }
 0x168   :  { %v963_v43 = vmul.f32 %v1396_v18, %v1726_v23  ;;  %v1398_v26 = vpop.eup %1397  ;;  %v954_v27 = vsel %vm952_vm13, %v953_v6, %v951_v33  ;;  %v967_v29 = vand.u32 2147483648, %v1726_v23  ;;  %v1810_v30 = vadd.f32 %v760_v13, %v728_v11 }
 0x169   :  { %1124 = vst [vmem:[#allocation7 + $0x50] sm:$0xff] %v1238_v21  ;;  %v958_v28 = vsel %vm957_vm14, %v1722_v19, %v956_v5  ;;  %v970_v37 = vmul.f32 %v1398_v26, %v1728_v25  ;;  %v761_v38 = vmul.f32 %v695_v22, %v695_v22  ;;  %vm971_vm1 = vcmp.eq.f32.partialorder %v1728_v25, inf }
 0x16a   :  { %v961_v31 = vsel %vm959_vm15, %v960_v32, %v958_v28  ;;  %v965_v34 = vsel %vm964_vm0, %v1726_v23, %v963_v43  ;;  %v974_v10 = vand.u32 2147483648, %v1728_v25  ;;  %1407 = vrsqrt.f32 %v1810_v30 }
 0x16b   :  { %v1239_v40 = vpack.c.bf16 %v961_v31, %v954_v27  ;;  %vm966_vm2 = vcmp.eq.f32.partialorder %v1726_v23, 0.0  ;;  %v972_v19 = vsel %vm971_vm1, %v1728_v25, %v970_v37  ;;  %vm973_vm3 = vcmp.eq.f32.partialorder %v1728_v25, 0.0 }
 0x16c   :  { %v793_v41 = vadd.f32 %v761_v38, %v729_v3  ;;  %v968_v42 = vsel %vm966_vm2, %v967_v29, %v965_v34  ;;  %v975_v44 = vsel %vm973_vm3, %v974_v10, %v972_v19  ;;  %vm978_vm4 = vcmp.eq.f32.partialorder %v1766_v60, inf }
 0x16d   :  { %1125 = vst [vmem:[#allocation7 + $0x58] sm:$0xff] %v1239_v40  ;;  %v1240_v46 = vpack.c.bf16 %v975_v44, %v968_v42  ;;  %v981_v16 = vand.u32 2147483648, %v1766_v60  ;;  %vm985_vm5 = vcmp.eq.f32.partialorder %v1768_v62, inf  ;;  %v988_v25 = vand.u32 2147483648, %v1768_v62 }
 0x16e   :  { %1409 = vrsqrt.f32 %v793_v41  ;;  %vm980_vm6 = vcmp.eq.f32.partialorder %v1766_v60, 0.0  ;;  %vm987_vm7 = vcmp.eq.f32.partialorder %v1768_v62, 0.0  ;;  %vm992_vm8 = vcmp.eq.f32.partialorder %v1782_v8, inf }
 0x16f   :  { %v1400_v12 = vpop.eup %1399  ;;  %1126 = vst [vmem:[#allocation7 + $0x60] sm:$0xff] %v1240_v46  ;;  %v995_v61 = vand.u32 2147483648, %v1782_v8  ;;  %vm999_vm9 = vcmp.eq.f32.partialorder %v1784_v9, inf  ;;  %vm994_vm10 = vcmp.eq.f32.partialorder %v1782_v8, 0.0  ;;  %vm1001_vm11 = vcmp.eq.f32.partialorder %v1784_v9, 0.0 }
 0x170   :  { %v1402_v4 = vpop.eup %1401  ;;  %v977_v47 = vmul.f32 %v1400_v12, %v1766_v60  ;;  %vm1006_vm12 = vcmp.eq.f32.partialorder %v1810_v30, inf  ;;  %v1009_v20 = vand.u32 2147483648, %v1810_v30  ;;  %vm1013_vm13 = vcmp.eq.f32.partialorder %v793_v41, inf }
 0x171   :  { %v984_v48 = vmul.f32 %v1402_v4, %v1768_v62  ;;  %v1016_v1 = vand.u32 2147483648, %v793_v41  ;;  %vm1008_vm14 = vcmp.eq.f32.partialorder %v1810_v30, 0.0  ;;  %vm1015_vm15 = vcmp.eq.f32.partialorder %v793_v41, 0.0 }
 0x172   :  { %v979_v23 = vsel %vm978_vm4, %v1766_v60, %v977_v47  ;;  %v1404_v35 = vpop.eup %1403  ;;  %v1002_v60 = vand.u32 2147483648, %v1784_v9 }
 0x173   :  { %v986_v58 = vsel %vm985_vm5, %v1768_v62, %v984_v48  ;;  %v982_v49 = vsel %vm980_vm6, %v981_v16, %v979_v23  ;;  %v991_v52 = vmul.f32 %v1404_v35, %v1782_v8 }
 0x174   :  { %v989_v51 = vsel %vm987_vm7, %v988_v25, %v986_v58  ;;  %v1406_v53 = vpop.eup %1405 }
 0x175   :  { %v1241_v55 = vpack.c.bf16 %v989_v51, %v982_v49  ;;  %v993_v56 = vsel %vm992_vm8, %v1782_v8, %v991_v52  ;;  %v998_v57 = vmul.f32 %v1406_v53, %v1784_v9 }
 0x176   :  { %v996_v54 = vsel %vm994_vm10, %v995_v61, %v993_v56 }
 0x177   :  { %1127 = vst [vmem:[#allocation7 + $0x68] sm:$0xff] %v1241_v55  ;;  %v1408_v62 = vpop.eup %1407  ;;  %v1000_v63 = vsel %vm999_vm9, %v1784_v9, %v998_v57 }
 0x178   :  { %v1003_v59 = vsel %vm1001_vm11, %v1002_v60, %v1000_v63  ;;  %v1005_v0 = vmul.f32 %v1408_v62, %v1810_v30 }
 0x179   :  { %v1242_v24 = vpack.c.bf16 %v1003_v59, %v996_v54 }
 0x17a   :  { %v1007_v39 = vsel %vm1006_vm12, %v1810_v30, %v1005_v0 }
 0x17b   :  { %v1410_v36 = vpop.eup %1409  ;;  %1128 = vst [vmem:[#allocation7 + $0x70] sm:$0xff] %v1242_v24  ;;  %v1010_v6 = vsel %vm1008_vm14, %v1009_v20, %v1007_v39 }
 0x17c   :  { %v1012_v45 = vmul.f32 %v1410_v36, %v793_v41 }
 0x17e   :  { %v1014_v2 = vsel %vm1013_vm13, %v793_v41, %v1012_v45 }
 0x17f   :  { %v1017_v8 = vsel %vm1015_vm15, %v1016_v1, %v1014_v2 }
 0x180   :  { %v1243_v9 = vpack.c.bf16 %v1017_v8, %v1010_v6 }
 0x182   :  { %1129 = vst [vmem:[#allocation7 + $0x78] sm:$0xff] %v1243_v9 }
 0x183   :  { %1462 = shalt.err (!%p1459_p0)
}
 0x184   :  { %s1482_s22 = smov 128   ;;  %s1483_s23 = smov 8  }
 0x185   :  { %1141 = dma.vmem_to_hbm [thread:$0]  %s1136_s1, 2048, %s1850_s2, [#allocation4], %s1482_s22, %s1482_s22, %s1483_s23  }
 0x186   :  { %1475 = dma.done.wait [#allocation4], 2048  }
 0x187   :  { %1476 = vsyncadd [#allocation4], 4294965248 }
 0x188   :  { %1145 = vsyncpa [#allocation3], 1 }
 0x189   :  { %1146 = vsyncpa [#allocation6], 1 }
 0x18a   :  { %1147 = vsyncpa [#allocation4], 1 }

</bundles_post_ra>
